<compile_context>
chip_gen: v5e
topology: v5e:2x2
jax: 0.10.0
libtpu: 0.0.40
codegen_flags: <defaults>
</compile_context>

<pallas_src>
import functools

import jax
import jax.numpy as jnp
from jax import lax
from jax.experimental import pallas as pl
from jax.experimental.pallas import tpu as pltpu


def _round_up(x, m):
    return (x + m - 1) // m * m


def _pick_tile(n_pad, cap):
    """Largest multiple of 128 that divides n_pad and is <= cap."""
    t = max(128, min(cap, n_pad))
    while n_pad % t:
        t -= 128
    return t


def _device_kind():
    try:
        return jax.devices()[0].device_kind.lower()
    except Exception:
        return ""


def _vmem_capacity_bytes():
    try:
        cap = int(pltpu.get_tpu_info().vmem_capacity_bytes)
        if cap > 0:
            return cap
    except Exception:
        pass
    kind = _device_kind()
    if "v7" in kind or "7x" in kind:
        return 64 * 1024 * 1024
    return 128 * 1024 * 1024


def _use_bf16_exp():
    # v6e/v7x have a bf16 EUP/VPU path; v5e and older do not (bf16 exp there
    # would only add pack/unpack work), so keep the exponent in f32 on them.
    kind = _device_kind()
    return not any(t in kind for t in ("v2", "v3", "v4", "v5"))


def _vmem_limit(estimate_bytes, capacity_bytes):
    # Scoped-VMEM limit derived from detected per-core capacity (64 MiB on
    # v7x, 128 MiB on v5e/v6e) with headroom for Mosaic internal scratch.
    headroom = 8 * 1024 * 1024
    want = max(32 * 1024 * 1024, int(1.25 * estimate_bytes) + 4 * 1024 * 1024)
    return int(min(capacity_bytes - headroom, want))


def _proj_kernel(x_ref, w_ref, b_ref, q_ref, k_ref, v_ref, *, c8p):
    # x_ref: (1, Cp, tk) f32 ; w_ref: (Ctot, Cp) bf16 ; b_ref: (Ctot, 1) f32
    xb = x_ref[0].astype(jnp.bfloat16)
    p = jnp.dot(w_ref[...], xb, preferred_element_type=jnp.float32) + b_ref[...]
    q_ref[0] = p[:c8p].astype(q_ref.dtype)
    k_ref[0, 0] = p[c8p:2 * c8p].astype(k_ref.dtype)
    v_ref[0, 0] = p[2 * c8p:].astype(v_ref.dtype)


def _flash_kernel(q_ref, k_ref, v_ref, x_ref, gamma_ref, o_ref,
                  m_sc, l_sc, acc_sc, *,
                  n_actual, k_chunk, n_chunks, need_mask, exp_bf16):
    f32 = jnp.float32
    bf16 = jnp.bfloat16

    q = q_ref[0]                                    # (C8p, tq) bf16

    # Fresh online-softmax state for this (batch, q-tile) grid step.
    # -inf init is safe because a key chunk can never be fully padded
    # (Np - N < 128 <= k_chunk), so m becomes finite on the first step.
    m_sc[...] = jnp.full_like(m_sc, -jnp.inf)
    l_sc[...] = jnp.zeros_like(l_sc)
    acc_sc[...] = jnp.zeros_like(acc_sc)

    def step(ci, mask_bias):
        k = k_ref[0, ci]                            # (C8p, tk) bf16 (resident)
        v = v_ref[0, ci]                            # (Cp,  tk) bf16 (resident)
        # s[j, i] = sum_c k[c, j] * q[c, i] -> (tk, tq): keys on sublanes,
        # queries on lanes.  The MXU consumes the transposed operands via the
        # dot_general dimension numbers (no explicit transpose op emitted;
        # verify with pl.lower_as_mlir if in doubt).
        s = lax.dot_general(k, q, (((0,), (0,)), ((), ())),
                            preferred_element_type=f32)
        if mask_bias is not None:                   # only on the last chunk
            s = s + mask_bias                       # (tk, 1) broadcast over lanes
        m_prev = m_sc[...]
        m_new = jnp.maximum(m_prev, jnp.max(s, axis=0, keepdims=True))
        alpha = jnp.exp(m_prev - m_new)             # (1, tq)
        if exp_bf16:
            # v6e/v7x: bf16 EUP halves exp + ld/st traffic on the (tk,tq) tile
            # and removes the separate f32->bf16 cast before the PV matmul.
            p = jnp.exp((s - m_new).astype(bf16))
            p_sum = jnp.sum(p, axis=0, keepdims=True, dtype=f32)
        else:
            # v5e: no bf16 EUP/VPU -> keep the exp in f32, cast only for MXU.
            p32 = jnp.exp(s - m_new)
            p_sum = jnp.sum(p32, axis=0, keepdims=True)
            p = p32.astype(bf16)
        l_sc[...] = alpha * l_sc[...] + p_sum
        # acc[c, i] += sum_j v[c, j] * p[j, i]  (plain matmul, no transpose)
        acc_sc[...] = alpha * acc_sc[...] + jnp.dot(
            v, p, preferred_element_type=f32)
        m_sc[...] = m_new

    n_unmasked = n_chunks - 1 if need_mask else n_chunks
    if n_unmasked > 0:
        @pl.loop(0, n_unmasked)
        def _(ci):
            step(ci, None)

    if need_mask:
        # Only the final chunk contains padded key positions: build a cheap
        # (tk, 1) additive bias once and broadcast it, instead of a full
        # (tk, tq) iota/compare/select on every chunk.
        base = (n_chunks - 1) * k_chunk
        kidx = base + lax.broadcasted_iota(jnp.int32, (k_chunk, 1), 0)
        bias = jnp.where(kidx < n_actual, jnp.float32(0.0), jnp.float32(-1e30))
        step(n_chunks - 1, bias)

    # Approximate reciprocal runs on the EUP slot (essentially free); ~1e-3
    # relative error on the softmax normalization, covered by the tolerance.
    inv_l = pl.reciprocal(l_sc[...], approx=True)
    out = gamma_ref[0] * (acc_sc[...] * inv_l) + x_ref[0]
    o_ref[0] = out.astype(o_ref.dtype)


def self_attn_forward(x_nchw, wq, bq, wk, bk, wv, bv, gamma,
                      *, q_tile_cap=256, k_chunk_cap=1024):
    """x_nchw: (B, C, W, H) float32. Returns (B, C, W, H) float32."""
    B, C, W, H = x_nchw.shape
    N = W * H
    C8 = wq.shape[0]

    f32, bf16 = jnp.float32, jnp.bfloat16

    # bf16 packs two rows per 32-bit sublane -> round channel dims to 16 so
    # every q/k/v tile is a fully packed (16, 128) bf16 tile.
    Cp = _round_up(C, 16)
    C8p = _round_up(C8, 16)
    Np = _round_up(N, 128)
    Ctot = 2 * C8p + Cp

    tq = _pick_tile(Np, q_tile_cap)
    tk = _pick_tile(Np, k_chunk_cap)     # in-kernel key chunk == proj N tile
    n_chunks = Np // tk
    need_mask = (Np != N)

    vmem_cap = _vmem_capacity_bytes()
    exp_bf16 = _use_bf16_exp()

    x_flat = jnp.pad(x_nchw.astype(f32).reshape(B, C, N),
                     ((0, 0), (0, Cp - C), (0, Np - N)))

    def pad_w(w, rows):
        return jnp.pad(w.astype(f32),
                       ((0, rows - w.shape[0]), (0, Cp - w.shape[1])))

    w_all = jnp.concatenate(
        [pad_w(wq, C8p), pad_w(wk, C8p), pad_w(wv, Cp)], axis=0).astype(bf16)
    b_all = jnp.concatenate(
        [jnp.pad(bq.astype(f32), (0, C8p - C8)),
         jnp.pad(bk.astype(f32), (0, C8p - C8)),
         jnp.pad(bv.astype(f32), (0, Cp - C))]).reshape(Ctot, 1)

    # ---- Kernel 1: stacked q/k/v projection (1x1 convs as one matmul) ----
    proj_est = (2 * Cp * tk * 4
                + 2 * (Ctot * Cp * 2 + Ctot * 128 * 4)
                + 2 * (2 * C8p + Cp) * tk * 2
                + Ctot * tk * 4)
    proj_cost = pl.CostEstimate(
        flops=2 * B * Np * Ctot * Cp,
        transcendentals=0,
        bytes_accessed=(B * Cp * Np * 4 + Ctot * Cp * 2
                        + B * (2 * C8p + Cp) * Np * 2))
    q, k, v = pl.pallas_call(
        functools.partial(_proj_kernel, c8p=C8p),
        out_shape=(jax.ShapeDtypeStruct((B, C8p, Np), bf16),
                   jax.ShapeDtypeStruct((B, n_chunks, C8p, tk), bf16),
                   jax.ShapeDtypeStruct((B, n_chunks, Cp, tk), bf16)),
        grid_spec=pltpu.PrefetchScalarGridSpec(
            num_scalar_prefetch=0,
            grid=(B, n_chunks),
            in_specs=[
                pl.BlockSpec((1, Cp, tk), lambda b, n: (b, 0, n)),      # x
                pl.BlockSpec((Ctot, Cp), lambda b, n: (0, 0)),          # W stacked
                pl.BlockSpec((Ctot, 1), lambda b, n: (0, 0)),           # b stacked
            ],
            out_specs=(
                pl.BlockSpec((1, C8p, tk), lambda b, n: (b, 0, n)),        # q
                pl.BlockSpec((1, 1, C8p, tk), lambda b, n: (b, n, 0, 0)),  # k
                pl.BlockSpec((1, 1, Cp, tk), lambda b, n: (b, n, 0, 0)),   # v
            ),
        ),
        compiler_params=pltpu.CompilerParams(
            dimension_semantics=("parallel", "parallel"),
            vmem_limit_bytes=_vmem_limit(proj_est, vmem_cap)),
        cost_estimate=proj_cost,
    )(x_flat, w_all, b_all)

    # ---- Kernel 2: flash attention + gamma * out + x residual ----
    gamma_arr = jnp.asarray(gamma, f32).reshape(1)

    kv_bytes = (C8p + Cp) * Np * 2
    # Constant-index resident K/V blocks gain nothing from double buffering
    # once they start to dominate VMEM (v7x: 64 MiB/TC) -> single-buffer them.
    kv_single_buffer = (2 * kv_bytes > vmem_cap // 3)

    def kv_spec(shape, imap):
        if kv_single_buffer:
            return pl.BlockSpec(shape, imap, pipeline_mode=pl.Buffered(1))
        return pl.BlockSpec(shape, imap)

    kv_bufs = 1 if kv_single_buffer else 2
    flash_est = (kv_bufs * kv_bytes
                 + 2 * C8p * tq * 2              # q tile (double buffered)
                 + 2 * Cp * tq * 4               # x tile
                 + 2 * Cp * tq * 4               # out tile
                 + (Cp * tq + 2 * tq) * 4        # acc/m/l scratch
                 + tk * tq * (4 + 4 + 2))        # s / p temporaries
    flash_cost = pl.CostEstimate(
        flops=2 * B * Np * Np * (C8p + Cp),
        transcendentals=B * Np * Np,
        bytes_accessed=B * Np * (C8p * 2 + (C8p + Cp) * 2 + Cp * 4 + Cp * 4))

    out_flat = pl.pallas_call(
        functools.partial(_flash_kernel, n_actual=N, k_chunk=tk,
                          n_chunks=n_chunks, need_mask=need_mask,
                          exp_bf16=exp_bf16),
        out_shape=jax.ShapeDtypeStruct((B, Cp, Np), f32),
        grid_spec=pltpu.PrefetchScalarGridSpec(
            num_scalar_prefetch=0,
            grid=(B, Np // tq),
            in_specs=[
                pl.BlockSpec((1, C8p, tq), lambda b, qi: (b, 0, qi)),         # q
                kv_spec((1, n_chunks, C8p, tk), lambda b, qi: (b, 0, 0, 0)),  # k (resident)
                kv_spec((1, n_chunks, Cp, tk), lambda b, qi: (b, 0, 0, 0)),   # v (resident)
                pl.BlockSpec((1, Cp, tq), lambda b, qi: (b, 0, qi)),          # x residual
                pl.BlockSpec(memory_space=pltpu.MemorySpace.SMEM),            # gamma
            ],
            out_specs=pl.BlockSpec((1, Cp, tq), lambda b, qi: (b, 0, qi)),
            scratch_shapes=[
                pltpu.VMEM((1, tq), f32),    # running max
                pltpu.VMEM((1, tq), f32),    # running sum
                pltpu.VMEM((Cp, tq), f32),   # output accumulator
            ],
        ),
        compiler_params=pltpu.CompilerParams(
            dimension_semantics=("parallel", "parallel"),
            vmem_limit_bytes=_vmem_limit(flash_est, vmem_cap)),
        cost_estimate=flash_cost,
        # Residual x aliases the output buffer (same shape/dtype; each x
        # block is fully consumed before its output block is written).
        input_output_aliases={3: 0},
    )(q, k, v, x_flat, gamma_arr)

    return out_flat[:, :C, :N].reshape(B, C, W, H)


def _reference(x_nchw, wq, bq, wk, bk, wv, bv, gamma):
    B, C, W, H = x_nchw.shape
    N = W * H
    xf = x_nchw.reshape(B, C, N)
    q = jnp.einsum("oc,bcn->bon", wq, xf) + bq[None, :, None]   # (B, C8, N)
    k = jnp.einsum("oc,bcn->bon", wk, xf) + bk[None, :, None]   # (B, C8, N)
    v = jnp.einsum("oc,bcn->bon", wv, xf) + bv[None, :, None]   # (B, C,  N)
    energy = jnp.einsum("bci,bcj->bij", q, k)                   # (B, N, N)
    att = jax.nn.softmax(energy, axis=-1)
    out = jnp.einsum("bcj,bij->bci", v, att)                    # (B, C, N)
    out = gamma * out + xf
    return out.reshape(B, C, W, H)


def _run_case(key, B, C, W, H, gamma_val, **kw):
    C8 = max(C // 8, 1)
    kx, kq, kk, kv, kbq, kbk, kbv = jax.random.split(key, 7)

    x = jax.random.normal(kx, (B, C, W, H), dtype=jnp.float32)
    # Conv2d 1x1 weights -> (out_ch, in_ch); biases -> (out_ch,).
    wq = 0.1 * jax.random.normal(kq, (C8, C), dtype=jnp.float32)
    wk = 0.1 * jax.random.normal(kk, (C8, C), dtype=jnp.float32)
    wv = 0.1 * jax.random.normal(kv, (C, C), dtype=jnp.float32)
    bq = 0.1 * jax.random.normal(kbq, (C8,), dtype=jnp.float32)
    bk = 0.1 * jax.random.normal(kbk, (C8,), dtype=jnp.float32)
    bv = 0.1 * jax.random.normal(kbv, (C,), dtype=jnp.float32)
    # Module initializes gamma = 0 (out == x); nonzero exercises attention.
    gamma = jnp.float32(gamma_val)

    out = self_attn_forward(x, wq, bq, wk, bk, wv, bv, gamma, **kw)
    out = jax.block_until_ready(out)

    ref = _reference(x, wq, bq, wk, bk, wv, bv, gamma)
    assert out.shape == (B, C, W, H)
    max_err = float(jnp.max(jnp.abs(out - ref)))
    # bf16 MXU operands (and bf16 exp on v6e/v7x) with f32 accumulation.
    assert jnp.allclose(out, ref, atol=2e-2, rtol=2e-2), (
        f"case B={B} C={C} W={W} H={H}: max err {max_err}")


if __name__ == "__main__":
    key = jax.random.PRNGKey(0)
    k1, k2 = jax.random.split(key)
    # Case 1: module-typical small shape; single resident key chunk + mask.
    _run_case(k1, B=2, C=16, W=8, H=8, gamma_val=0.5)
    # Case 2: forces multiple key chunks (N=144 -> Np=256, tk=tq=128) to
    # exercise the in-kernel pl.loop over resident K/V plus the masked tail.
    _run_case(k2, B=2, C=32, W=12, H=12, gamma_val=0.5,
              q_tile_cap=128, k_chunk_cap=128)
    print("KERNEL_OK")
</pallas_src>

<mosaic_0001>
module attributes {stable_mosaic.version = 11 : i64} {
  func.func @_proj_kernel(%arg0: i32, %arg1: i32, %arg2: memref<1x16x128xf32, #tpu.memory_space<vmem>>, %arg3: memref<48x16xbf16, #tpu.memory_space<vmem>>, %arg4: memref<48x1xf32, #tpu.memory_space<vmem>>, %arg5: memref<1x16x128xbf16, #tpu.memory_space<vmem>>, %arg6: memref<1x1x16x128xbf16, #tpu.memory_space<vmem>>, %arg7: memref<1x1x16x128xbf16, #tpu.memory_space<vmem>>) attributes {dimension_semantics = [#tpu.dimension_semantics<parallel>, #tpu.dimension_semantics<parallel>], iteration_bounds = array<i64: 2, 1>, scalar_prefetch = 0 : i64, scratch_operands = 0 : i64, tpu.core_type = #tpu.core_type<tc>, window_params = [{transform_indices = @transform_0, window_bounds = array<i64: 1, 16, 128>}, {pipeline_mode = #tpu.pipeline_mode<synchronous>, transform_indices = @transform_1, window_bounds = array<i64: 48, 16>}, {pipeline_mode = #tpu.pipeline_mode<synchronous>, transform_indices = @transform_2, window_bounds = array<i64: 48, 1>}, {transform_indices = @transform_3, window_bounds = array<i64: 1, 16, 128>}, {transform_indices = @transform_4, window_bounds = array<i64: 1, 1, 16, 128>}, {transform_indices = @transform_5, window_bounds = array<i64: 1, 1, 16, 128>}]} {
    %c0 = arith.constant 0 : index
    %c0_0 = arith.constant 0 : index
    %c0_1 = arith.constant 0 : index
    %0 = vector.load %arg2[%c0, %c0_0, %c0_1] : memref<1x16x128xf32, #tpu.memory_space<vmem>>, vector<1x16x128xf32>
    %1 = vector.shape_cast %0 : vector<1x16x128xf32> to vector<16x128xf32>
    %2 = arith.truncf %1 : vector<16x128xf32> to vector<16x128xbf16>
    %c0_2 = arith.constant 0 : index
    %c0_3 = arith.constant 0 : index
    %3 = vector.load %arg3[%c0_2, %c0_3] : memref<48x16xbf16, #tpu.memory_space<vmem>>, vector<48x16xbf16>
    %cst = arith.constant dense<0.000000e+00> : vector<48x128xf32>
    %4 = tpu.matmul %3, %2, %cst {dimension_numbers = #tpu.dot_dimension_numbers<[1], [0], [0], [1], [0, 0, 1, 1], [], []>} : vector<48x16xbf16>, vector<16x128xbf16>, vector<48x128xf32> -> vector<48x128xf32>
    %c0_4 = arith.constant 0 : index
    %c0_5 = arith.constant 0 : index
    %5 = vector.load %arg4[%c0_4, %c0_5] : memref<48x1xf32, #tpu.memory_space<vmem>>, vector<48x1xf32>
    %6 = vector.broadcast %5 : vector<48x1xf32> to vector<48x128xf32>
    %7 = arith.addf %4, %6 : vector<48x128xf32>
    %8 = vector.extract_strided_slice %7 {offsets = [0, 0], sizes = [16, 128], strides = [1, 1]} : vector<48x128xf32> to vector<16x128xf32>
    %9 = arith.truncf %8 : vector<16x128xf32> to vector<16x128xbf16>
    %c0_6 = arith.constant 0 : index
    %c0_7 = arith.constant 0 : index
    %c0_8 = arith.constant 0 : index
    %10 = vector.load %arg5[%c0_6, %c0_7, %c0_8] : memref<1x16x128xbf16, #tpu.memory_space<vmem>>, vector<1x16x128xbf16>
    %11 = vector.shape_cast %10 : vector<1x16x128xbf16> to vector<16x128xbf16>
    %12 = vector.shape_cast %9 : vector<16x128xbf16> to vector<1x16x128xbf16>
    tpu.vector_store %arg5[%c0_6, %c0_7, %c0_8], %12 {strides = array<i32>} : memref<1x16x128xbf16, #tpu.memory_space<vmem>>, vector<1x16x128xbf16>,
    %13 = vector.extract_strided_slice %7 {offsets = [16, 0], sizes = [16, 128], strides = [1, 1]} : vector<48x128xf32> to vector<16x128xf32>
    %14 = arith.truncf %13 : vector<16x128xf32> to vector<16x128xbf16>
    %c0_9 = arith.constant 0 : index
    %c0_10 = arith.constant 0 : index
    %c0_11 = arith.constant 0 : index
    %c0_12 = arith.constant 0 : index
    %15 = vector.load %arg6[%c0_9, %c0_10, %c0_11, %c0_12] : memref<1x1x16x128xbf16, #tpu.memory_space<vmem>>, vector<1x1x16x128xbf16>
    %16 = vector.shape_cast %15 : vector<1x1x16x128xbf16> to vector<16x128xbf16>
    %17 = vector.shape_cast %14 : vector<16x128xbf16> to vector<1x1x16x128xbf16>
    tpu.vector_store %arg6[%c0_9, %c0_10, %c0_11, %c0_12], %17 {strides = array<i32>} : memref<1x1x16x128xbf16, #tpu.memory_space<vmem>>, vector<1x1x16x128xbf16>,
    %18 = vector.extract_strided_slice %7 {offsets = [32, 0], sizes = [16, 128], strides = [1, 1]} : vector<48x128xf32> to vector<16x128xf32>
    %19 = arith.truncf %18 : vector<16x128xf32> to vector<16x128xbf16>
    %c0_13 = arith.constant 0 : index
    %c0_14 = arith.constant 0 : index
    %c0_15 = arith.constant 0 : index
    %c0_16 = arith.constant 0 : index
    %20 = vector.load %arg7[%c0_13, %c0_14, %c0_15, %c0_16] : memref<1x1x16x128xbf16, #tpu.memory_space<vmem>>, vector<1x1x16x128xbf16>
    %21 = vector.shape_cast %20 : vector<1x1x16x128xbf16> to vector<16x128xbf16>
    %22 = vector.shape_cast %19 : vector<16x128xbf16> to vector<1x1x16x128xbf16>
    tpu.vector_store %arg7[%c0_13, %c0_14, %c0_15, %c0_16], %22 {strides = array<i32>} : memref<1x1x16x128xbf16, #tpu.memory_space<vmem>>, vector<1x1x16x128xbf16>,
    return
  }
  func.func @transform_0(%arg0: i32, %arg1: i32) -> (i32, i32, i32) {
    %c0_i32 = arith.constant 0 : i32
    %c0_i32_0 = arith.constant 0 : i32
    return %arg0, %c0_i32, %arg1 : i32, i32, i32
  }
  func.func @transform_1(%arg0: i32, %arg1: i32) -> (i32, i32) {
    %c0_i32 = arith.constant 0 : i32
    %c0_i32_0 = arith.constant 0 : i32
    %c0_i32_1 = arith.constant 0 : i32
    return %c0_i32, %c0_i32_0 : i32, i32
  }
  func.func @transform_2(%arg0: i32, %arg1: i32) -> (i32, i32) {
    %c0_i32 = arith.constant 0 : i32
    %c0_i32_0 = arith.constant 0 : i32
    %c0_i32_1 = arith.constant 0 : i32
    return %c0_i32, %c0_i32_0 : i32, i32
  }
  func.func @transform_3(%arg0: i32, %arg1: i32) -> (i32, i32, i32) {
    %c0_i32 = arith.constant 0 : i32
    %c0_i32_0 = arith.constant 0 : i32
    return %arg0, %c0_i32, %arg1 : i32, i32, i32
  }
  func.func @transform_4(%arg0: i32, %arg1: i32) -> (i32, i32, i32, i32) {
    %c0_i32 = arith.constant 0 : i32
    %c0_i32_0 = arith.constant 0 : i32
    %c0_i32_1 = arith.constant 0 : i32
    return %arg0, %arg1, %c0_i32, %c0_i32_0 : i32, i32, i32, i32
  }
  func.func @transform_5(%arg0: i32, %arg1: i32) -> (i32, i32, i32, i32) {
    %c0_i32 = arith.constant 0 : i32
    %c0_i32_0 = arith.constant 0 : i32
    %c0_i32_1 = arith.constant 0 : i32
    return %arg0, %arg1, %c0_i32, %c0_i32_0 : i32, i32, i32, i32
  }
}

</mosaic_0001>

<bundles_post_ra>
// kernel: tpu_custom_call.1
= control target key start
LH: loop header
LB: loop body
LE: loop exit
PB: predicated region body
PF: predicated region fallthrough
CT: control target
= control target key end

     0   :  { %s1111_s0 = inlined_call_operand.vmem [shape: f32[2,16,128], index: 0, kind: input, shape index: {}]   ;;  %s1112_s1 = inlined_call_operand.vmem [shape: bf16[48,16], index: 1, kind: input, shape index: {}]   ;;  %s1113_s2 = inlined_call_operand.vmem [shape: f32[48,1], index: 2, kind: input, shape index: {}]   ;;  %s1114_s3 = inlined_call_operand.hbm [shape: bf16[2,16,128], index: 3, kind: output, shape index: {0}]   ;;  %s1115_s4 = inlined_call_operand.hbm [shape: bf16[2,1,16,128], index: 4, kind: output, shape index: {1}]   ;;  %s1116_s5 = inlined_call_operand.hbm [shape: bf16[2,1,16,128], index: 5, kind: output, shape index: {2}]  }
   0x1   :  { %1122 = sst [smem:[#allocation11_spill]] %s1111_s0 }
   0x2   :  { %1123 = sst [smem:[#allocation12_spill]] %s1112_s1 }
   0x3   :  { %1124 = sst [smem:[#allocation13_spill]] %s1113_s2 }
   0x4   :  { %1125 = sst [smem:[#allocation14_spill]] %s1115_s4 }
   0x5   :  { %11 = vsyncpa [#allocation3], 0 }
   0x6   :  { %13 = vsyncpa [#allocation3 + $0x1], 0 }
   0x7   :  { %14 = vsyncpa [#allocation5], 0 }
   0x8   :  { %16 = vsyncpa [#allocation5 + $0x1], 0  ;;  %s893_s18 = smov 0   ;;  %s895_s19 = smov 0  }
   0x9   :  { %s897_s20 = smov 0   ;;  %s899_s21 = smov 0  }
   0xa   :  { %s901_s22 = smov 0   ;;  %s903_s23 = smov 0  }
   0xb LB: > { %s589_s24 = sadd.s32 4294967295, %s858_s23   ;;  %s1117_s25 = sadd.s32 4294967294, %s858_s23   ;;  %s858_s23 = sphi %s903_s23, %s22_s23   ;;  %s854_s22 = sphi %s901_s22, %s1147_s22   ;;  %s850_s21 = sphi %s899_s21, %s1146_s21   ;;  %s846_s20 = sphi %s897_s20, %s1145_s20   ;;  %s842_s19 = sphi %s895_s19, %s1144_s19   ;;  %s838_s18 = sphi %s893_s18, %s1143_s18  }
   0xc   : > { %s34_s26 = sadd.s32 1, %s854_s22  ;;  %s113_s27 = sadd.s32 1, %s846_s20 }
   0xd   : > { %p36_p0 = scmp.ge.s32.totalorder %s34_s26, 2  ;;  %p123_p1 = scmp.ne.s32.totalorder %s846_s20, %s842_s19 }
   0xe   : > { %p124_p2 = scmp.eq.s32.totalorder %s589_s24, 1  ;;  %p129_p3 = scmp.ne.s32.totalorder %s842_s19, %s838_s18 }
   0xf   : > { %s1149_s26 = smov (%p36_p0, %s34_s26), 0  ;;  %p130_p5 = scmp.eq.s32.totalorder %s1117_s25, 1 }
  0x10   : > { %p935_p4 = por %p124_p2, %p123_p1  ;;  %s108_s29 = ssub.s32 %s854_s22, %s1149_s26 }
  0x11   : > { %p593_p6 = scmp.ge.s32.totalorder %s858_s23, 1  ;;  %p111_p7 = scmp.eq.s32.totalorder %s108_s29, 0 }
  0x12   : > { %p944_p8 = por %p130_p5, %p129_p3  ;;  %p221_p9 = scmp.lt.s32.totalorder %s858_s23, 3 }
  0x13   : > { %s950_s6 = scalar_select %p111_p7, %s846_s20, %s113_s27  }
  0x14   : > { %p222_p10 = pnand %p593_p6, %p221_p9 }
  0x16   : > { %225 = sbr.rel (%p222_p10) target bundleno = 216 (0xd8), region = 32 }
  0x1b   : > { %p262_p11 = scmp.lt.s32.totalorder %s850_s21, 1  ;;  %v860_v0 = vmov 0   ;;  %s1128_s2 = sld [smem:[#allocation13_spill]]  ;;  %vm331_vm0 = vcmask 130048  }
  0x1c   : > { %717 = vset.pattern.permute.xlu0 %v860_v0  ;;  %718 = vset.pattern.permute.xlu1 %v860_v0  ;;  %s1129_s0 = sld [smem:[#allocation11_spill]]  ;;  %s990_s29 = sshll.u32 %s850_s21, 3 }
  0x1d   : > { %s263_s11 = scalar_select %p262_p11, %s850_s21, 1  ;;  %719 = vset.pattern.permute.xlu2 %v860_v0 }
  0x1e   : > { %s1130_s1 = sld [smem:[#allocation12_spill]]  ;;  %s1004_s21 = sand.u32 1, %s589_s24  }
  0x1f   : > { %s625_s14 = sshll.u32 %s263_s11, 4  ;;  %s1133_s4 = sld [smem:[#allocation14_spill]] }
  0x20   : > { %s400_s16 = scalar_lea.hbm %s1114_s3, %s990_s29  ;;  %s438_s15 = scalar_lea.hbm %s1116_s5, %s990_s29 }
  0x21   : > { %v282_v1 = vld [vmem:[%s1128_s2 + $0x10] sm:$0xff]  ;;  %v280_v2 = vld [vmem:[%s1128_s2] sm:$0xff]  ;;  %v283_v7 = vld [vmem:[%s1128_s2 + $0x18] sm:$0xff]  ;;  %s1014_s24 = sshll.u32 %s400_s16, 4  ;;  %s404_s24 = int_to_ptr.hbm [resolvable:$true] %s1014_s24 }
  0x22   : > { %298 = vperm.xlu0 %717, %v282_v1   ;;  %288 = vperm.xlu1 %718, %v280_v2   ;;  %v284_v3 = vld [vmem:[%s1128_s2 + $0x20] sm:$0xff]  ;;  %s269_s17 = scalar_lea.vmem %s1129_s0, %s625_s14  ;;  %v281_v10 = vld [vmem:[%s1128_s2 + $0x8] sm:$0xff] }
  0x23   : > { %308 = vperm.xlu2 %719, %v284_v3   ;;  %v271_v4 = vld [vmem:[%s269_s17] sm:$0xff]  ;;  %v272_v5 = vld [vmem:[%s269_s17 + $0x8] sm:$0xff]  ;;  %s1119_s17 = sand.u32 1, %s842_s19  }
  0x24   : > { %v273_v6 = vpack.c.bf16 %v272_v5, %v271_v4  ;;  %v626_v8 = vld [vmem:[%s1130_s1] sm:$0xff]  ;;  %v627_v9 = vld [vmem:[%s1130_s1 + $0x8] sm:$0xff]  ;;  %v628_v11 = vld [vmem:[%s1130_s1 + $0x10] sm:$0xff]  ;;  %s987_s27 = sshll.u32 %s1119_s17, 3 }
  0x25   : > { %v285_v12 = vld [vmem:[%s1128_s2 + $0x28] sm:$0xff]  ;;  %s247_s7 = scalar_lea.vmem [#allocation2], %s987_s27  ;;  %s254_s9 = scalar_lea.vmem [#allocation4], %s987_s27 }
  0x26   : > { %348 = vmatpush.bf16.msra.mxu0 %v273_v6  ;;  %647 = vmatpush.bf16.msra.mxu1 %v273_v6  ;;  %s993_s8 = sshll.u32 %s247_s7, 4  ;;  %s996_s10 = sshll.u32 %s254_s9, 4 }
  0x27   : > { %648 = vmatpush.bf16.msra.mxu2 %v273_v6  ;;  %1131 = sst [smem:[#allocation9_spill]] %s993_s8  ;;  %s419_s13 = scalar_lea.hbm %s1133_s4, %s990_s29 }
  0x28   : > { %1132 = sst [smem:[#allocation10_spill]] %s996_s10  ;;  %s1012_s11 = sshll.u32 %s419_s13, 4  ;;  %s423_s11 = int_to_ptr.hbm [resolvable:$true] %s1012_s11 }
  0x29   : > { %611 = vmatmul.msk.bf16.vlgmr.msra.gmra.mxu0 %vm331_vm0, %v626_v8  ;;  %612 = vmatmul.msk.bf16.vlgmr.msra.gmra.mxu1 %vm331_vm0, %v627_v9  ;;  %s1121_s25 = scalar_lea.vmem [#allocation6], %s987_s27  ;;  %s1027_s13 = sshll.u32 %s438_s15, 4  ;;  %s442_s13 = int_to_ptr.hbm [resolvable:$true] %s1027_s13 }
  0x2a   : > { %303 = vperm.xlu0 %717, %v283_v7   ;;  %293 = vperm.xlu1 %718, %v281_v10   ;;  %s1025_s8 = sshll.u32 %s1121_s25, 4  ;;  %s734_s17 = sshra.s32 %s423_s11, 4  ;;  %s735_s17 = int_to_ptr.hbm [resolvable:$true] %s734_s17  ;;  %s440_s8 = int_to_ptr.vmem [resolvable:$true] %s1025_s8 }
  0x2b   : > { %613 = vmatmul.msk.bf16.vlgmr.msra.gmra.mxu2 %vm331_vm0, %v628_v11  ;;  %313 = vperm.xlu2 %719, %v285_v12   ;;  %s736_s10 = scalar_lea.hbm %s735_s17, 8  ;;  %p741_p1 = scmp.lt.s32.totalorder %s735_s17, %s1133_s4 }
  0x2c   : > { %p737_p12 = scmp.ne.s32.totalorder %s735_s17, %s736_s10 }
  0x2e   : > { %p738_p13 = pnand %p737_p12, %p935_p4 }
  0x30   : > { %p739_p0 = pneg %p738_p13 }
  0x7d   : > { %v309_v17 = vpop.permute.xlu2 %308 }
  0x85   : > { %v314_v29 = vpop.permute.xlu2 %313 }
  0x94   : > { %v299_v13 = vpop.permute.xlu0 %298  ;;  %v289_v14 = vpop.permute.xlu1 %288 }
  0x9c   : > { %v304_v18 = vpop.permute.xlu0 %303  ;;  %v294_v19 = vpop.permute.xlu1 %293 }
  0xa6   : > { %v350_v15 = vpop.f32.mrf.mxu0  ;;  %v355_v16 = vpop.f32.mrf.mxu1 }
  0xa7   : > { %v351_v23 = vadd.f32 %v350_v15, %v289_v14  ;;  %v356_v24 = vadd.f32 %v355_v16, %v299_v13 }
  0xae   : > { %v360_v20 = vpop.f32.mrf.mxu2  ;;  %v352_v21 = vpop.f32.mrf.mxu0 }
  0xaf   : > { %v357_v22 = vpop.f32.mrf.mxu1  ;;  %v353_v25 = vadd.f32 %v352_v21, %v294_v19 }
  0xb0   : > { %v358_v26 = vadd.f32 %v357_v22, %v304_v18 }
  0xb1   : > { %v635_v27 = vpack.c.bf16 %v353_v25, %v351_v23 }
  0xb2   : > { %v640_v28 = vpack.c.bf16 %v358_v26, %v356_v24 }
  0xb3   : > { %636 = vst [vmem:[%s247_s7] sm:$0xff] %v635_v27  }
  0xb4   : > { %641 = vst [vmem:[%s254_s9] sm:$0xff] %v640_v28   ;;  %s740_s9 = scalar_lea.hbm %s1133_s4, 16 }
  0xb5   : > { %p742_p2 = scmp.lt.s32.totalorder %s740_s9, %s736_s10 }
  0xb6   : > { %v362_v30 = vpop.f32.mrf.mxu2 }
  0xb7   : > { %p743_p3 = por %p742_p2, %p741_p1 }
  0xb9   : > { %p744_p5 = pnand %p743_p3, %p739_p0 }
  0xbb   : > { %747 = shalt.err (!%p744_p5)
}
  0xbc   : > { %s861_s15 = smov 64   ;;  %s1134_s25 = sld [smem:[#allocation10_spill]]  ;;  %v361_v31 = vadd.f32 %v360_v20, %v309_v17  ;;  %v363_v32 = vadd.f32 %v362_v30, %v314_v29 }
  0xbd   : > { %s862_s16 = smov 4   ;;  %s1135_s29 = scalar_lea.sflag [#allocation5], %s1004_s21 }
  0xbe   : > { %s1137_s17 = sand.u32 1, %s842_s19   ;;  %s762_s9 = sshra.s32 %s404_s24, 4  ;;  %s763_s9 = int_to_ptr.hbm [resolvable:$true] %s762_s9 }
  0xbf   : > { %s378_s10 = scalar_lea.sflag [#allocation3], %s1137_s17  ;;  %s764_s12 = scalar_lea.hbm %s763_s9, 8 }
  0xc0   : > { %p765_p6 = scmp.ne.s32.totalorder %s763_s9, %s764_s12  ;;  %s768_s1 = scalar_lea.hbm %s1114_s3, 16 }
  0xc1   : > { %p769_p10 = scmp.lt.s32.totalorder %s763_s9, %s1114_s3  ;;  %p770_p11 = scmp.lt.s32.totalorder %s768_s1, %s764_s12 }
  0xc2   : > { %s1136_s7 = int_to_ptr.vmem [resolvable:$true] %s1134_s25  ;;  %p766_p7 = pnand %p765_p6, %p935_p4 }
  0xc3   : > { %650 = dma.vmem_to_hbm [thread:$0]  (%p935_p4), %s1136_s7, 128, %s423_s11, %s1135_s29, %s861_s15, %s861_s15, %s862_s16  }
  0xc4   : > { %p767_p9 = pneg %p766_p7  ;;  %p771_p12 = por %p770_p11, %p769_p10 }
  0xc6   : > { %p772_p13 = pnand %p771_p12, %p767_p9 }
  0xc8   : > { %775 = shalt.err (!%p772_p13)
}
  0xc9   : > { %s1138_s25 = sld [smem:[#allocation9_spill]]  ;;  %v645_v33 = vpack.c.bf16 %v363_v32, %v361_v31  ;;  %s1140_s0 = scalar_lea.vmem [#allocation6], %s987_s27 }
  0xca   : > { %s790_s1 = sshra.s32 %s442_s13, 4  ;;  %s796_s7 = scalar_lea.hbm %s1116_s5, 16  ;;  %s791_s1 = int_to_ptr.hbm [resolvable:$true] %s790_s1 }
  0xcb   : > { %646 = vst [vmem:[%s1140_s0] sm:$0xff] %v645_v33   ;;  %s792_s2 = scalar_lea.hbm %s791_s1, 8  ;;  %p797_p3 = scmp.lt.s32.totalorder %s791_s1, %s1116_s5 }
  0xcc   : > { %p793_p0 = scmp.ne.s32.totalorder %s791_s1, %s792_s2  ;;  %p798_p5 = scmp.lt.s32.totalorder %s796_s7, %s792_s2 }
  0xce   : > { %p794_p1 = pnand %p793_p0, %p935_p4  ;;  %p799_p6 = por %p798_p5, %p797_p3 }
  0xcf   : > { %s1139_s11 = int_to_ptr.vmem [resolvable:$true] %s1138_s25 }
  0xd0   : > { %649 = dma.vmem_to_hbm [thread:$0]  (%p935_p4), %s1139_s11, 128, %s404_s24, %s378_s10, %s861_s15, %s861_s15, %s862_s16  }
  0xd1   : > { %p795_p2 = pneg %p794_p1 }
  0xd3   : > { %p800_p7 = pnand %p799_p6, %p795_p2 }
  0xd5   : > { %803 = shalt.err (!%p800_p7)
}
  0xd6   : > { %s1141_s27 = scalar_lea.sflag [#allocation5], %s1004_s21 }
  0xd7   : > { %651 = dma.vmem_to_hbm [thread:$0]  (%p935_p4), %s440_s8, 128, %s442_s13, %s1141_s27, %s861_s15, %s861_s15, %s862_s16  }
  0xd8 PF: > { %p665_p9 = scmp.ge.s32.totalorder %s858_s23, 2  ;;  %s456_s24 = sand.u32 1, %s838_s18  }
  0xd9   : > { %s457_s10 = scalar_lea.sflag [#allocation3], %s456_s24 }
  0xda   : > { %p656_p10 = pnand %p665_p9, %p944_p8 }
  0xdc   : > { %p657_p11 = pneg %p656_p10 }
  0xde   : > { %829 = dma.done.wait (%p657_p11), %s457_s10, 128  }
  0xdf   : > { %831 = vsyncadd (%p657_p11), %s457_s10, 4294967168  ;;  %s1142_s28 = sadd.s32 4294967294, %s858_s23  }
  0xe0   : > { %s466_s12 = sand.u32 1, %s1142_s28  }
  0xe1   : > { %s467_s14 = scalar_lea.sflag [#allocation5], %s466_s12 }
  0xe2   : > { %833 = dma.done.wait (%p657_p11), %s467_s14, 256  }
  0xe3   : > { %835 = vsyncadd (%p657_p11), %s467_s14, 4294967040  ;;  %s22_s23 = sadd.s32 1, %s858_s23   ;;  %s1143_s18 = smov %s842_s19 }
  0xe4   : > { %p19_p4 = scmp.ge.s32.totalorder %s22_s23, 4   ;;  %s1144_s19 = smov %s846_s20 }
  0xe5   : > { %s1145_s20 = smov %s950_s6  ;;  %s1146_s21 = smov %s854_s22 }
  0xe6   : > { %s1147_s22 = smov %s1149_s26  ;;  %21 = sbr.rel (!%p19_p4) target bundleno = 11 (0xb), region = 99 }
  0xeb   :  { %483 = vsyncpa [#allocation3], 1 }
  0xec   :  { %485 = vsyncpa [#allocation3 + $0x1], 1 }
  0xed   :  { %486 = vsyncpa [#allocation5], 1 }
  0xee   :  { %488 = vsyncpa [#allocation5 + $0x1], 1 }

</bundles_post_ra>
